<compile_context>
chip_gen: v6e
topology: v6e:2x2x1
jax: 0.10.0
libtpu: 0.0.40
codegen_flags: <defaults>
</compile_context>

<pallas_src>
import jax
import jax.numpy as jnp
from jax.experimental import pallas as pl
from jax.experimental.pallas import tpu as pltpu


def mlp_kernel(x_ref, w1_ref, w2_ref, w3_ref, b3_ref, prior_ref, out_ref):
    wdt = w1_ref.dtype
    # Hidden layer 1: Linear(n_in -> 64, bias=False) + ReLU
    h = jnp.dot(x_ref[...], w1_ref[...], preferred_element_type=jnp.float32)
    h = jnp.maximum(h, 0.0).astype(wdt)
    # Hidden layer 2: Linear(64 -> 64, bias=False) + ReLU
    h = jnp.dot(h, w2_ref[...], preferred_element_type=jnp.float32)
    h = jnp.maximum(h, 0.0).astype(wdt)
    # Final layer: Linear(64 -> n_out, bias=True); output_activation=None -> identity
    o = jnp.dot(h, w3_ref[...], preferred_element_type=jnp.float32)
    # bias + prior (has_prior_pred=True, prior_pred_op='add'): free VPU slots.
    out_ref[...] = (o + b3_ref[...] + prior_ref[...]).astype(out_ref.dtype)


def _forward_small(x, w1_t, w2_t, w3_t, b3_2d, prior):
    """Gridless single-tile path: whole arrays live in VMEM, no grid bookkeeping."""
    B = x.shape[0]
    n_out = w3_t.shape[1]
    vmem = pl.BlockSpec(memory_space=pltpu.MemorySpace.VMEM)
    return pl.pallas_call(
        mlp_kernel,
        out_shape=jax.ShapeDtypeStruct((B, n_out), jnp.float32),
        in_specs=[vmem] * 6,
        out_specs=vmem,
    )(x, w1_t, w2_t, w3_t, b3_2d, prior)


def _forward_tiled(x, w1_t, w2_t, w3_t, b3_2d, prior, tb):
    """Batch-tiled path: grid over batch (>=2 steps), weights replicated &
    resident, batch axis 'parallel' (shards across v7x's 2 TCs, auto-pipelined
    DMA).  Ragged last tile handled by Pallas edge-block clipping."""
    B, n_in = x.shape
    h1 = w1_t.shape[1]
    h2 = w2_t.shape[1]
    n_out = w3_t.shape[1]
    grid = (pl.cdiv(B, tb),)
    return pl.pallas_call(
        mlp_kernel,
        out_shape=jax.ShapeDtypeStruct((B, n_out), jnp.float32),
        grid=grid,
        in_specs=[
            pl.BlockSpec((tb, n_in), lambda i: (i, 0)),    # x tile (last dim == full)
            pl.BlockSpec((n_in, h1), lambda i: (0, 0)),    # weights: resident, no re-DMA
            pl.BlockSpec((h1, h2), lambda i: (0, 0)),
            pl.BlockSpec((h2, n_out), lambda i: (0, 0)),
            pl.BlockSpec((1, n_out), lambda i: (0, 0)),    # bias
            pl.BlockSpec((tb, n_out), lambda i: (i, 0)),   # prior, unpadded (B, 8)
        ],
        out_specs=pl.BlockSpec((tb, n_out), lambda i: (i, 0)),  # unpadded (B, 8) output
        compiler_params=pltpu.CompilerParams(
            dimension_semantics=("parallel",),
        ),
    )(x, w1_t, w2_t, w3_t, b3_2d, prior)


def _round_up(v, m):
    return ((v + m - 1) // m) * m


def regression_model_forward(x, W1, W2, W3, b3, prior_pred, *,
                             batch_tile=1024, small_batch_cutoff=512,
                             compute_dtype=None):
    """PyTorchRegressionModel.forward for units=[64,64], relu, prior_pred_op='add'.

    x:          (B, n_in)        float32
    W1, W2, W3: PyTorch Linear weights, shape (out_dim, in_dim)
    b3:         (n_out,) or (1, n_out) final-layer bias
    prior_pred: (B, n_out)
    compute_dtype: optional (e.g. jnp.bfloat16) for x/weights; dots accumulate
                   in f32; bias/prior/output stay f32.
    Returns (B, n_out) float32.
    """
    B, _ = x.shape
    n_out = W3.shape[0]

    # Plain-JAX glue: transpose weights (layout only, tiny arrays).
    w1_t = W1.T                          # (n_in, h1)
    w2_t = W2.T                          # (h1, h2)
    w3_t = W3.T                          # (h2, n_out)
    b3_2d = b3.reshape(1, n_out).astype(jnp.float32)
    prior = prior_pred.astype(jnp.float32)

    if compute_dtype is not None:
        x = x.astype(compute_dtype)
        w1_t = w1_t.astype(compute_dtype)
        w2_t = w2_t.astype(compute_dtype)
        w3_t = w3_t.astype(compute_dtype)

    if B <= small_batch_cutoff:
        return _forward_small(x, w1_t, w2_t, w3_t, b3_2d, prior)

    # Tile size: <= batch_tile, multiple of 8, and always >=2 grid steps so the
    # "parallel" batch axis can use both TensorCores on v7x.
    tb = min(batch_tile, _round_up(pl.cdiv(B, 2), 8))
    return _forward_tiled(x, w1_t, w2_t, w3_t, b3_2d, prior, tb)


def reference_forward(x, W1, W2, W3, b3, prior_pred):
    h = jnp.maximum(x @ W1.T, 0.0)
    h = jnp.maximum(h @ W2.T, 0.0)
    return h @ W3.T + b3.reshape(1, -1) + prior_pred


if __name__ == "__main__":
    # Mirrors PyTorchRegressionModel(n_in=32, n_out=8, units=[64,64], use_bias=False,
    # activation='relu', has_prior_pred=True, prior_pred_op='add').
    n_in, n_out = 32, 8
    units = [64, 64]
    batch = 8

    key = jax.random.PRNGKey(0)
    k_x, k_w1, k_w2, k_w3, k_b3, k_prior, k_xl, k_pl = jax.random.split(key, 8)

    # Deterministic parameter init (uniform, roughly PyTorch's 1/sqrt(fan_in) scale).
    def init_w(k, out_dim, in_dim):
        bound = 1.0 / jnp.sqrt(in_dim)
        return jax.random.uniform(k, (out_dim, in_dim), jnp.float32, -bound, bound)

    W1 = init_w(k_w1, units[0], n_in)      # nn.Linear(32, 64, bias=False).weight
    W2 = init_w(k_w2, units[1], units[0])  # nn.Linear(64, 64, bias=False).weight
    W3 = init_w(k_w3, n_out, units[1])     # nn.Linear(64, 8, bias=True).weight
    b3 = jax.random.uniform(k_b3, (n_out,), jnp.float32,
                            -1.0 / jnp.sqrt(units[1]), 1.0 / jnp.sqrt(units[1]))

    # --- small-batch (gridless) path, f32 ---
    x = jax.random.normal(k_x, (batch, n_in), jnp.float32)
    prior_pred = jax.random.normal(k_prior, (batch, n_out), jnp.float32)

    out = regression_model_forward(x, W1, W2, W3, b3, prior_pred)
    out = jax.block_until_ready(out)
    ref = reference_forward(x, W1, W2, W3, b3, prior_pred)
    assert out.shape == (batch, n_out)
    assert jnp.allclose(out, ref, atol=1e-4, rtol=1e-4), "small-batch mismatch vs JAX reference"

    # --- batch-tiled 'parallel' path with a ragged last tile (300 = 2*128 + 44) ---
    big_batch = 300
    x_big = jax.random.normal(k_xl, (big_batch, n_in), jnp.float32)
    prior_big = jax.random.normal(k_pl, (big_batch, n_out), jnp.float32)
    out_big = regression_model_forward(x_big, W1, W2, W3, b3, prior_big,
                                       batch_tile=128, small_batch_cutoff=64)
    out_big = jax.block_until_ready(out_big)
    ref_big = reference_forward(x_big, W1, W2, W3, b3, prior_big)
    assert out_big.shape == (big_batch, n_out)
    assert jnp.allclose(out_big, ref_big, atol=1e-4, rtol=1e-4), \
        "tiled/ragged mismatch vs JAX reference"

    # --- optional bf16 compute path (x/weights bf16, f32 MXU accumulation) ---
    out_bf16 = regression_model_forward(x, W1, W2, W3, b3, prior_pred,
                                        compute_dtype=jnp.bfloat16)
    out_bf16 = jax.block_until_ready(out_bf16)
    assert out_bf16.shape == (batch, n_out)
    assert jnp.allclose(out_bf16, ref, atol=1e-1, rtol=1e-1), "bf16 path mismatch"

    # TODO(synk): compute_loss / fit / predict (masked MSE/Poisson/CE losses, Adam
    # training loop, numpy transposes) are host-side training utilities and are not
    # part of this forward-pass kernel.
    print("KERNEL_OK")
</pallas_src>

<mosaic_0001>
module attributes {stable_mosaic.version = 11 : i64} {
  func.func @mlp_kernel(%arg0: memref<8x32xf32, #tpu.memory_space<vmem>>, %arg1: memref<32x64xf32, #tpu.memory_space<vmem>>, %arg2: memref<64x64xf32, #tpu.memory_space<vmem>>, %arg3: memref<64x8xf32, #tpu.memory_space<vmem>>, %arg4: memref<1x8xf32, #tpu.memory_space<vmem>>, %arg5: memref<8x8xf32, #tpu.memory_space<vmem>>, %arg6: memref<8x8xf32, #tpu.memory_space<vmem>>) attributes {dimension_semantics = [], scalar_prefetch = 0 : i64, scratch_operands = 0 : i64, tpu.core_type = #tpu.core_type<tc>} {
    %c0 = arith.constant 0 : index
    %c0_0 = arith.constant 0 : index
    %0 = vector.load %arg0[%c0, %c0_0] : memref<8x32xf32, #tpu.memory_space<vmem>>, vector<8x32xf32>
    %c0_1 = arith.constant 0 : index
    %c0_2 = arith.constant 0 : index
    %1 = vector.load %arg1[%c0_1, %c0_2] : memref<32x64xf32, #tpu.memory_space<vmem>>, vector<32x64xf32>
    %cst = arith.constant dense<0.000000e+00> : vector<8x64xf32>
    %2 = tpu.matmul %0, %1, %cst {dimension_numbers = #tpu.dot_dimension_numbers<[1], [0], [0], [1], [0, 0, 1, 1], [], []>} : vector<8x32xf32>, vector<32x64xf32>, vector<8x64xf32> -> vector<8x64xf32>
    %cst_3 = arith.constant 0.000000e+00 : f32
    %3 = vector.broadcast %cst_3 : f32 to vector<8x64xf32>
    %4 = arith.maximumf %2, %3 : vector<8x64xf32>
    %c0_4 = arith.constant 0 : index
    %c0_5 = arith.constant 0 : index
    %5 = vector.load %arg2[%c0_4, %c0_5] : memref<64x64xf32, #tpu.memory_space<vmem>>, vector<64x64xf32>
    %cst_6 = arith.constant dense<0.000000e+00> : vector<8x64xf32>
    %6 = tpu.matmul %4, %5, %cst_6 {dimension_numbers = #tpu.dot_dimension_numbers<[1], [0], [0], [1], [0, 0, 1, 1], [], []>} : vector<8x64xf32>, vector<64x64xf32>, vector<8x64xf32> -> vector<8x64xf32>
    %cst_7 = arith.constant 0.000000e+00 : f32
    %7 = vector.broadcast %cst_7 : f32 to vector<8x64xf32>
    %8 = arith.maximumf %6, %7 : vector<8x64xf32>
    %c0_8 = arith.constant 0 : index
    %c0_9 = arith.constant 0 : index
    %9 = vector.load %arg3[%c0_8, %c0_9] : memref<64x8xf32, #tpu.memory_space<vmem>>, vector<64x8xf32>
    %cst_10 = arith.constant dense<0.000000e+00> : vector<8x8xf32>
    %10 = tpu.matmul %8, %9, %cst_10 {dimension_numbers = #tpu.dot_dimension_numbers<[1], [0], [0], [1], [0, 0, 1, 1], [], []>} : vector<8x64xf32>, vector<64x8xf32>, vector<8x8xf32> -> vector<8x8xf32>
    %c0_11 = arith.constant 0 : index
    %c0_12 = arith.constant 0 : index
    %11 = vector.load %arg4[%c0_11, %c0_12] : memref<1x8xf32, #tpu.memory_space<vmem>>, vector<1x8xf32>
    %12 = vector.broadcast %11 : vector<1x8xf32> to vector<8x8xf32>
    %13 = arith.addf %10, %12 : vector<8x8xf32>
    %c0_13 = arith.constant 0 : index
    %c0_14 = arith.constant 0 : index
    %14 = vector.load %arg5[%c0_13, %c0_14] : memref<8x8xf32, #tpu.memory_space<vmem>>, vector<8x8xf32>
    %15 = arith.addf %13, %14 : vector<8x8xf32>
    %c0_15 = arith.constant 0 : index
    %c0_16 = arith.constant 0 : index
    %16 = vector.load %arg6[%c0_15, %c0_16] : memref<8x8xf32, #tpu.memory_space<vmem>>, vector<8x8xf32>
    tpu.vector_store %arg6[%c0_15, %c0_16], %15 {strides = array<i32>} : memref<8x8xf32, #tpu.memory_space<vmem>>, vector<8x8xf32>,
    return
  }
}

</mosaic_0001>

<bundles_post_ra>
// kernel: tpu_custom_call.1
= control target key start
LH: loop header
LB: loop body
LE: loop exit
PB: predicated region body
PF: predicated region fallthrough
CT: control target
= control target key end

     0   :  { %11 = vsyncpa [#allocation3], 0  ;;  %s564_s0 = inlined_call_operand.vmem [shape: f32[8,32], index: 0, kind: input, shape index: {}]   ;;  %s565_s1 = inlined_call_operand.hbm [shape: f32[32,64], index: 1, kind: input, shape index: {}]   ;;  %s566_s2 = inlined_call_operand.vmem [shape: f32[64,64], index: 2, kind: input, shape index: {}]   ;;  %s567_s3 = inlined_call_operand.vmem [shape: f32[64,8], index: 3, kind: input, shape index: {}]   ;;  %s568_s4 = inlined_call_operand.vmem [shape: f32[1,8], index: 4, kind: input, shape index: {}]   ;;  %s569_s5 = inlined_call_operand.vmem [shape: f32[8,8], index: 5, kind: input, shape index: {}]   ;;  %s570_s6 = inlined_call_operand.hbm [shape: f32[8,8], index: 6, kind: output, shape index: {}]  }
   0x1   :  { %12 = vsyncpa [#allocation4], 0  ;;  %s434_s21 = smov [#allocation2]  }
   0x2   :  { %s20_s22 = sshll.u32 %s434_s21, 4  ;;  %s21_s22 = int_to_ptr.vmem [resolvable:$true] %s20_s22 }
   0x3   :  { %s398_s23 = scalar_lea.vmem %s21_s22, 512  ;;  %p403_p1 = scmp.lt.s32.totalorder %s21_s22, %s21_s22 }
   0x4   :  { %p399_p0 = scmp.ne.s32.totalorder %s21_s22, %s398_s23  ;;  %p404_p2 = scmp.lt.s32.totalorder %s398_s23, %s398_s23 }
   0x6   :  { %p405_p3 = por %p404_p2, %p403_p1 }
   0x8   :  { %p406_p4 = pnand %p405_p3, %p399_p0 }
   0xa   :  { %409 = shalt.err (!%p406_p4)
}
   0xb   :  { %s435_s24 = smov 128   ;;  %s436_s25 = smov 8  }
   0xc   :  { %26 = dma.hbm_to_vmem [thread:$0]  %s565_s1, 512, %s21_s22, [#allocation3], %s435_s24, %s435_s24, %s436_s25  }
   0xd   :  { %430 = dma.done.wait [#allocation3], 512  }
   0xe   :  { %431 = vsyncadd [#allocation3], 4294966784  ;;  %v437_v0 = vmov 0.0   ;;  %vm438_vm0 = vmmov 0   ;;  %v42_v1 = vld [vmem:[#allocation2 + $0x18] sm:$0xff]  ;;  %v41_v2 = vld [vmem:[#allocation2 + $0x10] sm:$0xff] }
   0xf   :  { %335 = vmatprep.subr.mxu0 %v437_v0  ;;  %343 = vmatprep.mubr.msk.f32.mxu0 %vm438_vm0, %v437_v0  ;;  %v125_v3 = vld [vmem:[%s566_s2 + $0x38] sm:$0xff]  ;;  %v40_v4 = vld [vmem:[#allocation2 + $0x8] sm:$0xff]  ;;  %v124_v5 = vld [vmem:[%s566_s2 + $0x30] sm:$0xff]  ;;  %vm43_vm1 = vcmask 261120   ;;  %vm126_vm2 = vcmask 523264   ;;  %s439_s14 = smov [#allocation5]  }
  0x10   :  { %346 = vmatprep.subr.mxu1 %v437_v0  ;;  %362 = vmatprep.mubr.msk.f32.mxu1 %vm438_vm0, %v437_v0  ;;  %v123_v6 = vld [vmem:[%s566_s2 + $0x28] sm:$0xff]  ;;  %v39_v7 = vld [vmem:[#allocation2] sm:$0xff]  ;;  %v121_v10 = vld [vmem:[%s566_s2 + $0x18] sm:$0xff]  ;;  %vm291_vm3 = vcmask 64512  }
  0x11   :  { %336 = vmatpush3.msra.mxu0 %v42_v1  ;;  %347 = vmatpush3.msra.mxu1 %v125_v3  ;;  %v38_v8 = vld [vmem:[%s564_s0] sm:$0xff]  ;;  %v120_v11 = vld [vmem:[%s566_s2 + $0x10] sm:$0xff]  ;;  %v119_v12 = vld [vmem:[%s566_s2 + $0x8] sm:$0xff]  ;;  %s299_s0 = sshll.u32 %s439_s14, 4  ;;  %s300_s0 = int_to_ptr.vmem [resolvable:$true] %s299_s0 }
  0x12   :  { %337 = vmatprep.subr.mxu0 %v437_v0  ;;  %348 = vmatprep.subr.mxu1 %v437_v0  ;;  %v122_v9 = vld [vmem:[%s566_s2 + $0x20] sm:$0xff]  ;;  %v208_v14 = vld [vmem:[%s567_s3 + $0x38] sm:$0xff]  ;;  %v207_v15 = vld [vmem:[%s567_s3 + $0x30] sm:$0xff]  ;;  %p415_p6 = scmp.lt.s32.totalorder %s300_s0, %s300_s0 }
  0x13   :  { %338 = vmatpush3.msra.mxu0 %v41_v2  ;;  %349 = vmatpush3.msra.mxu1 %v124_v5  ;;  %v118_v13 = vld [vmem:[%s566_s2] sm:$0xff]  ;;  %v206_v16 = vld [vmem:[%s567_s3 + $0x28] sm:$0xff]  ;;  %v204_v18 = vld [vmem:[%s567_s3 + $0x18] sm:$0xff] }
  0x14   :  { %339 = vmatprep.subr.mxu0 %v437_v0  ;;  %350 = vmatprep.subr.mxu1 %v437_v0  ;;  %v205_v17 = vld [vmem:[%s567_s3 + $0x20] sm:$0xff]  ;;  %v203_v19 = vld [vmem:[%s567_s3 + $0x10] sm:$0xff]  ;;  %v202_v23 = vld [vmem:[%s567_s3 + $0x8] sm:$0xff] }
  0x15   :  { %340 = vmatpush3.msra.mxu0 %v40_v4  ;;  %351 = vmatpush3.msra.mxu1 %v123_v6  ;;  %v201_v24 = vld [vmem:[%s567_s3] sm:$0xff]  ;;  %s410_s3 = scalar_lea.vmem %s300_s0, 128 }
  0x16   :  { %341 = vmatprep.subr.mxu0 %v437_v0  ;;  %352 = vmatprep.subr.mxu1 %v437_v0  ;;  %v310_v28 = vld [vmem:[%s568_s4] ss:$0 sm:$0xff]  ;;  %p411_p5 = scmp.ne.s32.totalorder %s300_s0, %s410_s3  ;;  %p416_p7 = scmp.lt.s32.totalorder %s410_s3, %s410_s3 }
  0x17   :  { %342 = vmatpush3.msra.mxu0 %v39_v7  ;;  %353 = vmatpush3.msra.mxu1 %v122_v9  ;;  %v289_v30 = vld [vmem:[%s569_s5] sm:$0xff] }
  0x18   :  { %344 = vmatmul.mubr.msk.f32.vlgmr.msra.gmra.mxu0 %vm43_vm1, %v38_v8  ;;  %354 = vmatprep.subr.mxu1 %v437_v0  ;;  %p417_p8 = por %p416_p7, %p415_p6 }
  0x19   :  { %365 = vmatprep.subr.mxu0 %v437_v0  ;;  %355 = vmatpush3.msra.mxu1 %v121_v10 }
  0x1a   :  { %381 = vmatprep.mubr.msk.f32.mxu0 %vm438_vm0, %v437_v0  ;;  %356 = vmatprep.subr.mxu1 %v437_v0  ;;  %p418_p9 = pnand %p417_p8, %p411_p5 }
  0x1b   :  { %357 = vmatpush3.msra.mxu1 %v120_v11  ;;  %366 = vmatpush3.msra.mxu0 %v208_v14 }
  0x1c   :  { %358 = vmatprep.subr.mxu1 %v437_v0  ;;  %367 = vmatprep.subr.mxu0 %v437_v0 }
  0x1d   :  { %359 = vmatpush3.msra.mxu1 %v119_v12  ;;  %368 = vmatpush3.msra.mxu0 %v207_v15 }
  0x1e   :  { %360 = vmatprep.subr.mxu1 %v437_v0  ;;  %369 = vmatprep.subr.mxu0 %v437_v0 }
  0x1f   :  { %361 = vmatpush3.msra.mxu1 %v118_v13  ;;  %370 = vmatpush3.msra.mxu0 %v206_v16 }
  0x20   :  { %371 = vmatprep.subr.mxu0 %v437_v0 }
  0x21   :  { %372 = vmatpush3.msra.mxu0 %v205_v17 }
  0x22   :  { %373 = vmatprep.subr.mxu0 %v437_v0 }
  0x23   :  { %374 = vmatpush3.msra.mxu0 %v204_v18 }
  0x24   :  { %375 = vmatprep.subr.mxu0 %v437_v0 }
  0x25   :  { %376 = vmatpush3.msra.mxu0 %v203_v19 }
  0x26   :  { %377 = vmatprep.subr.mxu0 %v437_v0 }
  0x27   :  { %378 = vmatpush3.msra.mxu0 %v202_v23 }
  0x28   :  { %379 = vmatprep.subr.mxu0 %v437_v0 }
  0x29   :  { %380 = vmatpush3.msra.mxu0 %v201_v24 }
  0xd8   :  { %v113_v20 = vpop.f32.mrf.mxu0 }
  0xd9   :  { %v117_v21 = vmax.f32 %v113_v20, 0.0 }
  0xda   :  { %v345_v22 = vpop.f32.mrf.mxu0 }
  0xdb   :  { %363 = vmatmul.mubr.msk.f32.vlgmr.msra.gmra.mxu1 %vm126_vm2, %v117_v21 }
 0x19b   :  { %v196_v25 = vpop.f32.mrf.mxu1 }
 0x19c   :  { %v200_v26 = vmax.f32 %v196_v25, 0.0 }
 0x19d   :  { %v364_v27 = vpop.f32.mrf.mxu1 }
 0x19e   :  { %382 = vmatmul.mubr.msk.f32.vlgmr.msra.gmra.mxu0 %vm126_vm2, %v200_v26 }
 0x25e   :  { %v285_v29 = vpop.f32.mrf.mxu0 }
 0x25f   :  { %v286_v31 = vadd.f32 %v310_v28, %v285_v29 }
 0x260   :  { %v383_v32 = vpop.f32.mrf.mxu0 }
 0x261   :  { %v290_v33 = vadd.f32 %v289_v30, %v286_v31 }
 0x263   :  { %292 = vst.msk [vmem:[#allocation5] sm:$0xff] %vm291_vm3, %v290_v33 }
 0x264   :  { %421 = shalt.err (!%p418_p9)
}
 0x265   :  { %302 = dma.vmem_to_hbm [thread:$0]  %s300_s0, 128, %s570_s6, [#allocation4]  }
 0x266   :  { %432 = dma.done.wait [#allocation4], 128  }
 0x267   :  { %433 = vsyncadd [#allocation4], 4294967168 }
 0x268   :  { %306 = vsyncpa [#allocation3], 1 }
 0x269   :  { %307 = vsyncpa [#allocation4], 1 }

</bundles_post_ra>
